<compile_context>
chip_gen: v6e
topology: v6e:2x2x1
jax: 0.10.0
libtpu: 0.0.40
codegen_flags: <defaults>
</compile_context>

<pallas_src>
import functools

import jax
import jax.numpy as jnp
from jax.experimental import pallas as pl
from jax.experimental.pallas import tpu as pltpu


def _convblock_kernel(x_ref, wa_ref, wb1_ref, wb2_ref, bias_ref,
                      o1_ref, o2_ref, *, width, height):
    # x_ref   : (B, Cin, S)        S = H*W, NCHW-flattened (free reshape).
    # wa_ref  : (2*Cout, Cin)      [w1[:, :, 0, 0] ; w2[:, :, 0, 0]]  (tap (h, w))
    # wb1_ref : (Cout, Cin)         w1[:, :, 0, 1]                    (tap (h, w+1))
    # wb2_ref : (Cout, Cin)         w2[:, :, 1, 0]                    (tap (h+1, w))
    # bias_ref: (2*Cout, 1)        [b1 ; b2]
    # o1_ref  : (B, Cout, S)        full width; dead column sliced in wrapper.
    # o2_ref  : (B, Cout, (H-1)*W)  valid rows only, stored directly.
    bsz = x_ref.shape[0]
    s = x_ref.shape[2]
    cout = o1_ref.shape[1]
    s_valid2 = (height - 1) * width

    wa = wa_ref[...]
    wb1 = wb1_ref[...]
    wb2 = wb2_ref[...]
    bias = bias_ref[...]

    # Fold batch into lanes: (Cin, B*S). Each piece is 128-lane aligned, so this
    # is plain vreg placement (no sublane relayout).
    xcat = jnp.concatenate([x_ref[b] for b in range(bsz)], axis=1)
    n = bsz * s

    # Shifted conv taps via XLU lane rotation. Wrapped garbage only reaches the
    # dead column / dead row that 'valid' padding removes (see header comment).
    x_wp1 = pltpu.roll(xcat, n - 1, 1)       # x[..., h, w+1]
    x_hp1 = pltpu.roll(xcat, n - width, 1)   # x[..., h+1, w]

    # Three accumulating MXU passes over a wide N = B*S lane axis.
    y0 = jnp.dot(wa, xcat, preferred_element_type=jnp.float32)     # (2*Cout, B*S)
    t1 = jnp.dot(wb1, x_wp1, preferred_element_type=jnp.float32)   # (Cout,  B*S)
    t2 = jnp.dot(wb2, x_hp1, preferred_element_type=jnp.float32)   # (Cout,  B*S)

    # Sublane-aligned split (Cout == 8), broadcast bias add + ReLU (VPU).
    y1 = jnp.maximum(y0[:cout] + t1 + bias[:cout], 0.0)
    y2 = jnp.maximum(y0[cout:] + t2 + bias[cout:], 0.0)

    for b in range(bsz):
        # Lane slices start at multiples of S (= 256): aligned, lane-dense stores.
        o1_ref[b] = y1[:, b * s:(b + 1) * s].astype(o1_ref.dtype)
        # conv2's valid rows are the contiguous first (H-1)*W lanes of each image.
        o2_ref[b] = y2[:, b * s:b * s + s_valid2].astype(o2_ref.dtype)


def conv_block_forward(x_nchw, w1, b1, w2, b2):
    """x_nchw: (B, Cin, H, W); w1: (Cout, Cin, 1, 2); w2: (Cout, Cin, 2, 1)."""
    B, Cin, H, W = x_nchw.shape
    Cout = w1.shape[0]
    S = H * W

    # Free, contiguous reshape — channels stay major, spatial lives in lanes.
    x_flat = x_nchw.reshape(B, Cin, S)

    # Tiny plain-JAX weight prep (no zero-padded K blocks, bias kept separate).
    wa = jnp.concatenate([w1[:, :, 0, 0], w2[:, :, 0, 0]], axis=0)   # (2*Cout, Cin)
    wb1 = w1[:, :, 0, 1]                                             # (Cout, Cin)
    wb2 = w2[:, :, 1, 0]                                             # (Cout, Cin)
    bias = jnp.concatenate([b1, b2], axis=0)[:, None]                # (2*Cout, 1)

    kernel = functools.partial(_convblock_kernel, width=W, height=H)

    y1_flat, y2_valid = pl.pallas_call(
        kernel,
        out_shape=(
            jax.ShapeDtypeStruct((B, Cout, S), x_nchw.dtype),
            jax.ShapeDtypeStruct((B, Cout, (H - 1) * W), x_nchw.dtype),
        ),
        grid_spec=pltpu.PrefetchScalarGridSpec(
            num_scalar_prefetch=0,
            grid=(1,),  # single step: whole problem fits VMEM (KiB-scale).
            in_specs=[
                pl.BlockSpec((B, Cin, S), lambda i: (0, 0, 0)),
                pl.BlockSpec((2 * Cout, Cin), lambda i: (0, 0)),
                pl.BlockSpec((Cout, Cin), lambda i: (0, 0)),
                pl.BlockSpec((Cout, Cin), lambda i: (0, 0)),
                pl.BlockSpec((2 * Cout, 1), lambda i: (0, 0)),
            ],
            out_specs=[
                pl.BlockSpec((B, Cout, S), lambda i: (0, 0, 0)),
                pl.BlockSpec((B, Cout, (H - 1) * W), lambda i: (0, 0, 0)),
            ],
        ),
        compiler_params=pltpu.CompilerParams(
            dimension_semantics=("arbitrary",)),
    )(x_flat, wa, wb1, wb2, bias)

    # out1's valid region (drop column W-1 of every row) is lane-strided, so a
    # single wrapper slice remains for it; out2 needs only a free reshape.
    out1 = y1_flat.reshape(B, Cout, H, W)[:, :, :, : W - 1]
    out2 = y2_valid.reshape(B, Cout, H - 1, W)
    return out1, out2


def _reference(x_nchw, w1, b1, w2, b2):
    """Pure-JAX reference (einsum form of the two valid convs + ReLU)."""
    y1 = (jnp.einsum('bchw,oc->bohw', x_nchw[:, :, :, :-1], w1[:, :, 0, 0])
          + jnp.einsum('bchw,oc->bohw', x_nchw[:, :, :, 1:], w1[:, :, 0, 1])
          + b1[None, :, None, None])
    y2 = (jnp.einsum('bchw,oc->bohw', x_nchw[:, :, :-1, :], w2[:, :, 0, 0])
          + jnp.einsum('bchw,oc->bohw', x_nchw[:, :, 1:, :], w2[:, :, 1, 0])
          + b2[None, :, None, None])
    return jnp.maximum(y1, 0.0), jnp.maximum(y2, 0.0)


if __name__ == "__main__":
    B, Cin, H, W = 2, 4, 16, 16
    Cout = 8  # multiple of 8 keeps the fused-output split sublane-aligned.

    key = jax.random.PRNGKey(0)
    kx, k1, kb1, k2, kb2 = jax.random.split(key, 5)

    x = jax.random.normal(kx, (B, Cin, H, W), dtype=jnp.float32)

    # Deterministic PyTorch-style Conv2d init: U(-1/sqrt(fan_in), 1/sqrt(fan_in)).
    fan1 = Cin * 1 * 2
    fan2 = Cin * 2 * 1
    bound1 = 1.0 / jnp.sqrt(fan1)
    bound2 = 1.0 / jnp.sqrt(fan2)
    w1 = jax.random.uniform(k1, (Cout, Cin, 1, 2), jnp.float32, -bound1, bound1)
    b1 = jax.random.uniform(kb1, (Cout,), jnp.float32, -bound1, bound1)
    w2 = jax.random.uniform(k2, (Cout, Cin, 2, 1), jnp.float32, -bound2, bound2)
    b2 = jax.random.uniform(kb2, (Cout,), jnp.float32, -bound2, bound2)

    out1, out2 = jax.jit(conv_block_forward)(x, w1, b1, w2, b2)
    jax.block_until_ready((out1, out2))

    ref1, ref2 = _reference(x, w1, b1, w2, b2)
    assert out1.shape == (B, Cout, H, W - 1), out1.shape
    assert out2.shape == (B, Cout, H - 1, W), out2.shape
    assert jnp.allclose(out1, ref1, atol=1e-5, rtol=1e-5)
    assert jnp.allclose(out2, ref2, atol=1e-5, rtol=1e-5)

    print("KERNEL_OK")
</pallas_src>

<mosaic_0001>
module attributes {stable_mosaic.version = 11 : i64} {
  func.func @_convblock_kernel(%arg0: i32, %arg1: memref<2x4x256xf32, #tpu.memory_space<vmem>>, %arg2: memref<16x4xf32, #tpu.memory_space<vmem>>, %arg3: memref<8x4xf32, #tpu.memory_space<vmem>>, %arg4: memref<8x4xf32, #tpu.memory_space<vmem>>, %arg5: memref<16x1xf32, #tpu.memory_space<vmem>>, %arg6: memref<2x8x256xf32, #tpu.memory_space<vmem>>, %arg7: memref<2x8x240xf32, #tpu.memory_space<vmem>>) attributes {dimension_semantics = [#tpu.dimension_semantics<arbitrary>], iteration_bounds = array<i64: 1>, scalar_prefetch = 0 : i64, scratch_operands = 0 : i64, tpu.core_type = #tpu.core_type<tc>, window_params = [{pipeline_mode = #tpu.pipeline_mode<synchronous>, transform_indices = @transform_0, window_bounds = array<i64: 2, 4, 256>}, {pipeline_mode = #tpu.pipeline_mode<synchronous>, transform_indices = @transform_1, window_bounds = array<i64: 16, 4>}, {pipeline_mode = #tpu.pipeline_mode<synchronous>, transform_indices = @transform_2, window_bounds = array<i64: 8, 4>}, {pipeline_mode = #tpu.pipeline_mode<synchronous>, transform_indices = @transform_3, window_bounds = array<i64: 8, 4>}, {pipeline_mode = #tpu.pipeline_mode<synchronous>, transform_indices = @transform_4, window_bounds = array<i64: 16, 1>}, {pipeline_mode = #tpu.pipeline_mode<synchronous>, transform_indices = @transform_5, window_bounds = array<i64: 2, 8, 256>}, {pipeline_mode = #tpu.pipeline_mode<synchronous>, transform_indices = @transform_6, window_bounds = array<i64: 2, 8, 240>}]} {
    %c0 = arith.constant 0 : index
    %c0_0 = arith.constant 0 : index
    %0 = vector.load %arg2[%c0, %c0_0] : memref<16x4xf32, #tpu.memory_space<vmem>>, vector<16x4xf32>
    %c0_1 = arith.constant 0 : index
    %c0_2 = arith.constant 0 : index
    %1 = vector.load %arg3[%c0_1, %c0_2] : memref<8x4xf32, #tpu.memory_space<vmem>>, vector<8x4xf32>
    %c0_3 = arith.constant 0 : index
    %c0_4 = arith.constant 0 : index
    %2 = vector.load %arg4[%c0_3, %c0_4] : memref<8x4xf32, #tpu.memory_space<vmem>>, vector<8x4xf32>
    %c0_5 = arith.constant 0 : index
    %c0_6 = arith.constant 0 : index
    %3 = vector.load %arg5[%c0_5, %c0_6] : memref<16x1xf32, #tpu.memory_space<vmem>>, vector<16x1xf32>
    %c0_7 = arith.constant 0 : index
    %c0_8 = arith.constant 0 : index
    %c0_9 = arith.constant 0 : index
    %4 = vector.load %arg1[%c0_7, %c0_8, %c0_9] : memref<2x4x256xf32, #tpu.memory_space<vmem>>, vector<1x4x256xf32>
    %5 = vector.shape_cast %4 : vector<1x4x256xf32> to vector<4x256xf32>
    %c1 = arith.constant 1 : index
    %c0_10 = arith.constant 0 : index
    %c0_11 = arith.constant 0 : index
    %6 = vector.load %arg1[%c1, %c0_10, %c0_11] : memref<2x4x256xf32, #tpu.memory_space<vmem>>, vector<1x4x256xf32>
    %7 = vector.shape_cast %6 : vector<1x4x256xf32> to vector<4x256xf32>
    %8 = tpu.concatenate %5, %7 in 1 : vector<4x256xf32>, vector<4x256xf32> -> vector<4x512xf32>
    %c511_i32 = arith.constant 511 : i32
    %9 = tpu.dynamic_rotate %8 by %c511_i32 dim 1 : vector<4x512xf32>, i32 -> vector<4x512xf32>
    %c496_i32 = arith.constant 496 : i32
    %10 = tpu.dynamic_rotate %8 by %c496_i32 dim 1 : vector<4x512xf32>, i32 -> vector<4x512xf32>
    %cst = arith.constant dense<0.000000e+00> : vector<16x512xf32>
    %11 = tpu.matmul %0, %8, %cst {dimension_numbers = #tpu.dot_dimension_numbers<[1], [0], [0], [1], [0, 0, 1, 1], [], []>} : vector<16x4xf32>, vector<4x512xf32>, vector<16x512xf32> -> vector<16x512xf32>
    %cst_12 = arith.constant dense<0.000000e+00> : vector<8x512xf32>
    %12 = tpu.matmul %1, %9, %cst_12 {dimension_numbers = #tpu.dot_dimension_numbers<[1], [0], [0], [1], [0, 0, 1, 1], [], []>} : vector<8x4xf32>, vector<4x512xf32>, vector<8x512xf32> -> vector<8x512xf32>
    %cst_13 = arith.constant dense<0.000000e+00> : vector<8x512xf32>
    %13 = tpu.matmul %2, %10, %cst_13 {dimension_numbers = #tpu.dot_dimension_numbers<[1], [0], [0], [1], [0, 0, 1, 1], [], []>} : vector<8x4xf32>, vector<4x512xf32>, vector<8x512xf32> -> vector<8x512xf32>
    %14 = vector.extract_strided_slice %11 {offsets = [0, 0], sizes = [8, 512], strides = [1, 1]} : vector<16x512xf32> to vector<8x512xf32>
    %15 = arith.addf %14, %12 : vector<8x512xf32>
    %16 = vector.extract_strided_slice %3 {offsets = [0, 0], sizes = [8, 1], strides = [1, 1]} : vector<16x1xf32> to vector<8x1xf32>
    %17 = vector.broadcast %16 : vector<8x1xf32> to vector<8x512xf32>
    %18 = arith.addf %15, %17 : vector<8x512xf32>
    %cst_14 = arith.constant 0.000000e+00 : f32
    %19 = vector.broadcast %cst_14 : f32 to vector<8x512xf32>
    %20 = arith.maximumf %18, %19 : vector<8x512xf32>
    %21 = vector.extract_strided_slice %11 {offsets = [8, 0], sizes = [8, 512], strides = [1, 1]} : vector<16x512xf32> to vector<8x512xf32>
    %22 = arith.addf %21, %13 : vector<8x512xf32>
    %23 = vector.extract_strided_slice %3 {offsets = [8, 0], sizes = [8, 1], strides = [1, 1]} : vector<16x1xf32> to vector<8x1xf32>
    %24 = vector.broadcast %23 : vector<8x1xf32> to vector<8x512xf32>
    %25 = arith.addf %22, %24 : vector<8x512xf32>
    %cst_15 = arith.constant 0.000000e+00 : f32
    %26 = vector.broadcast %cst_15 : f32 to vector<8x512xf32>
    %27 = arith.maximumf %25, %26 : vector<8x512xf32>
    %28 = vector.extract_strided_slice %20 {offsets = [0, 0], sizes = [8, 256], strides = [1, 1]} : vector<8x512xf32> to vector<8x256xf32>
    %c0_16 = arith.constant 0 : index
    %c0_17 = arith.constant 0 : index
    %c0_18 = arith.constant 0 : index
    %29 = vector.load %arg6[%c0_16, %c0_17, %c0_18] : memref<2x8x256xf32, #tpu.memory_space<vmem>>, vector<1x8x256xf32>
    %30 = vector.shape_cast %29 : vector<1x8x256xf32> to vector<8x256xf32>
    %31 = vector.shape_cast %28 : vector<8x256xf32> to vector<1x8x256xf32>
    tpu.vector_store %arg6[%c0_16, %c0_17, %c0_18], %31 {strides = array<i32>} : memref<2x8x256xf32, #tpu.memory_space<vmem>>, vector<1x8x256xf32>,
    %32 = vector.extract_strided_slice %27 {offsets = [0, 0], sizes = [8, 240], strides = [1, 1]} : vector<8x512xf32> to vector<8x240xf32>
    %c0_19 = arith.constant 0 : index
    %c0_20 = arith.constant 0 : index
    %c0_21 = arith.constant 0 : index
    %33 = vector.load %arg7[%c0_19, %c0_20, %c0_21] : memref<2x8x240xf32, #tpu.memory_space<vmem>>, vector<1x8x240xf32>
    %34 = vector.shape_cast %33 : vector<1x8x240xf32> to vector<8x240xf32>
    %35 = vector.shape_cast %32 : vector<8x240xf32> to vector<1x8x240xf32>
    tpu.vector_store %arg7[%c0_19, %c0_20, %c0_21], %35 {strides = array<i32>} : memref<2x8x240xf32, #tpu.memory_space<vmem>>, vector<1x8x240xf32>,
    %36 = vector.extract_strided_slice %20 {offsets = [0, 256], sizes = [8, 256], strides = [1, 1]} : vector<8x512xf32> to vector<8x256xf32>
    %c1_22 = arith.constant 1 : index
    %c0_23 = arith.constant 0 : index
    %c0_24 = arith.constant 0 : index
    %37 = vector.load %arg6[%c1_22, %c0_23, %c0_24] : memref<2x8x256xf32, #tpu.memory_space<vmem>>, vector<1x8x256xf32>
    %38 = vector.shape_cast %37 : vector<1x8x256xf32> to vector<8x256xf32>
    %39 = vector.shape_cast %36 : vector<8x256xf32> to vector<1x8x256xf32>
    tpu.vector_store %arg6[%c1_22, %c0_23, %c0_24], %39 {strides = array<i32>} : memref<2x8x256xf32, #tpu.memory_space<vmem>>, vector<1x8x256xf32>,
    %40 = vector.extract_strided_slice %27 {offsets = [0, 256], sizes = [8, 240], strides = [1, 1]} : vector<8x512xf32> to vector<8x240xf32>
    %c1_25 = arith.constant 1 : index
    %c0_26 = arith.constant 0 : index
    %c0_27 = arith.constant 0 : index
    %41 = vector.load %arg7[%c1_25, %c0_26, %c0_27] : memref<2x8x240xf32, #tpu.memory_space<vmem>>, vector<1x8x240xf32>
    %42 = vector.shape_cast %41 : vector<1x8x240xf32> to vector<8x240xf32>
    %43 = vector.shape_cast %40 : vector<8x240xf32> to vector<1x8x240xf32>
    tpu.vector_store %arg7[%c1_25, %c0_26, %c0_27], %43 {strides = array<i32>} : memref<2x8x240xf32, #tpu.memory_space<vmem>>, vector<1x8x240xf32>,
    return
  }
  func.func @transform_0(%arg0: i32) -> (i32, i32, i32) {
    %c0_i32 = arith.constant 0 : i32
    %c0_i32_0 = arith.constant 0 : i32
    %c0_i32_1 = arith.constant 0 : i32
    %c0_i32_2 = arith.constant 0 : i32
    return %c0_i32, %c0_i32_0, %c0_i32_1 : i32, i32, i32
  }
  func.func @transform_1(%arg0: i32) -> (i32, i32) {
    %c0_i32 = arith.constant 0 : i32
    %c0_i32_0 = arith.constant 0 : i32
    %c0_i32_1 = arith.constant 0 : i32
    return %c0_i32, %c0_i32_0 : i32, i32
  }
  func.func @transform_2(%arg0: i32) -> (i32, i32) {
    %c0_i32 = arith.constant 0 : i32
    %c0_i32_0 = arith.constant 0 : i32
    %c0_i32_1 = arith.constant 0 : i32
    return %c0_i32, %c0_i32_0 : i32, i32
  }
  func.func @transform_3(%arg0: i32) -> (i32, i32) {
    %c0_i32 = arith.constant 0 : i32
    %c0_i32_0 = arith.constant 0 : i32
    %c0_i32_1 = arith.constant 0 : i32
    return %c0_i32, %c0_i32_0 : i32, i32
  }
  func.func @transform_4(%arg0: i32) -> (i32, i32) {
    %c0_i32 = arith.constant 0 : i32
    %c0_i32_0 = arith.constant 0 : i32
    %c0_i32_1 = arith.constant 0 : i32
    return %c0_i32, %c0_i32_0 : i32, i32
  }
  func.func @transform_5(%arg0: i32) -> (i32, i32, i32) {
    %c0_i32 = arith.constant 0 : i32
    %c0_i32_0 = arith.constant 0 : i32
    %c0_i32_1 = arith.constant 0 : i32
    %c0_i32_2 = arith.constant 0 : i32
    return %c0_i32, %c0_i32_0, %c0_i32_1 : i32, i32, i32
  }
  func.func @transform_6(%arg0: i32) -> (i32, i32, i32) {
    %c0_i32 = arith.constant 0 : i32
    %c0_i32_0 = arith.constant 0 : i32
    %c0_i32_1 = arith.constant 0 : i32
    %c0_i32_2 = arith.constant 0 : i32
    return %c0_i32, %c0_i32_0, %c0_i32_1 : i32, i32, i32
  }
}

</mosaic_0001>

<bundles_post_ra>
// kernel: conv_block_forward.1
= control target key start
LH: loop header
LB: loop body
LE: loop exit
PB: predicated region body
PF: predicated region fallthrough
CT: control target
= control target key end

     0   :  { %vm72_vm0 = vcmask 1043456   ;;  %v635_v2 = vmov 0.0   ;;  %s636_s25 = smov 127   ;;  %vm65_vm1 = vcmask 31744   ;;  %v637_v7 = vmov 0   ;;  %s638_s29 = smov 112   ;;  %s742_s0 = inlined_call_operand.vmem [shape: f32[2,4,256], index: 0, kind: input, shape index: {}]   ;;  %s743_s1 = inlined_call_operand.vmem [shape: f32[16,4], index: 1, kind: input, shape index: {}]   ;;  %s744_s4 = inlined_call_operand.vmem [shape: f32[16,1], index: 4, kind: input, shape index: {}]   ;;  %s745_s2 = inlined_call_operand.vmem [shape: f32[8,4], index: 2, kind: input, shape index: {}]   ;;  %s746_s3 = inlined_call_operand.vmem [shape: f32[8,4], index: 3, kind: input, shape index: {}]   ;;  %s747_s5 = inlined_call_operand.vmem [shape: f32[2,8,256], index: 5, kind: output, shape index: {0}]   ;;  %s748_s6 = inlined_call_operand.vmem [shape: f32[2,8,240], index: 6, kind: output, shape index: {1}]  }
   0x1   :  { %v602_v0 = vld [vmem:[%s742_s0 + $0x8] sm:$0xff]  ;;  %v28_v1 = vld [vmem:[%s742_s0] sm:$0xff]  ;;  %145 = vmatprep.mubr.f32.mxu0 %v635_v2  ;;  %222 = vmatprep.mubr.f32.mxu1 %v635_v2  ;;  %v45_v10 = vlaneseq  ;;  %vm586_vm4 = vcmask 916480  }
   0x2   :  { %41 = vrot.lane.b32.xlu1 %v602_v0, %s636_s25  ;;  %37 = vrot.lane.b32.xlu0 %v28_v1, %s636_s25  ;;  %v35_v3 = vcombine.high %v602_v0, %v602_v0  ;;  %v32_v4 = vcombine.high %v28_v1, %v28_v1  ;;  %v22_v5 = vld [vmem:[%s743_s1] sm:$0xff]  ;;  %v23_v6 = vld [vmem:[%s743_s1 + $0x8] sm:$0xff] }
   0x3   :  { %631 = vset.pattern.permute.xlu0 %v637_v7  ;;  %632 = vset.pattern.permute.xlu1 %v637_v7  ;;  %v26_v8 = vld [vmem:[%s744_s4] sm:$0xff]  ;;  %v27_v9 = vld [vmem:[%s744_s4 + $0x8] sm:$0xff]  ;;  %v46_v11 = vand.u32 127, %v45_v10 }
   0x4   :  { %603 = vmatprep.subr.msk.mxu0 %vm72_vm0, %v32_v4  ;;  %607 = vmatprep.subr.msk.mxu1 %vm72_vm0, %v35_v3  ;;  %v24_v20 = vld [vmem:[%s745_s2] sm:$0xff] }
   0x5   :  { %604 = vmatpush1.msk.msra.mxu0 %vm72_vm0, %v28_v1  ;;  %608 = vmatpush1.msk.msra.mxu1 %vm72_vm0, %v602_v0  ;;  %vm47_vm2 = vcmp.lt.s32.totalorder %v46_v11, 127  ;;  %vm60_vm3 = vcmp.lt.s32.totalorder %v46_v11, 112  ;;  %v25_v28 = vld [vmem:[%s746_s3] sm:$0xff] }
   0x6   :  { %43 = vrot.lane.b32.xlu1 %v35_v3, %s636_s25  ;;  %39 = vrot.lane.b32.xlu0 %v32_v4, %s636_s25 }
   0x7   :  { %609 = vmatmul.mubr.msk.f32.vlgmr.msra.gmra.mxu1 %vm65_vm1, %v22_v5  ;;  %605 = vmatmul.mubr.msk.f32.vlgmr.msra.gmra.mxu0 %vm65_vm1, %v22_v5 }
   0x8   :  { %151 = vmatprep.mubr.f32.mxu0 %v635_v2  ;;  %228 = vmatprep.mubr.f32.mxu1 %v635_v2 }
   0xa   :  { %54 = vrot.lane.b32.xlu1 %v32_v4, %s638_s29  ;;  %52 = vrot.lane.b32.xlu0 %v28_v1, %s638_s29 }
   0xb   :  { %610 = vmatmul.mubr.msk.f32.gmra.mxu1 %vm65_vm1, %v23_v6  ;;  %606 = vmatmul.mubr.msk.f32.gmra.mxu0 %vm65_vm1, %v23_v6 }
   0xc   :  { %314 = vmatprep.mubr.f32.mxu0 %v635_v2  ;;  %385 = vmatprep.mubr.f32.mxu1 %v635_v2 }
   0xe   :  { %58 = vrot.lane.b32.xlu1 %v35_v3, %s638_s29  ;;  %56 = vrot.lane.b32.xlu0 %v602_v0, %s638_s29 }
  0x12   :  { %555 = vperm.xlu0 %631, %v26_v8   ;;  %572 = vperm.xlu1 %632, %v27_v9  }
  0x74   :  { %v42_v12 = vpop.permute.xlu1 %41  ;;  %v38_v13 = vpop.permute.xlu0 %37 }
  0x78   :  { %v44_v14 = vpop.permute.xlu1 %43  ;;  %v40_v15 = vpop.permute.xlu0 %39 }
  0x79   :  { %v48_v16 = vsel %vm47_vm2, %v42_v12, %v44_v14  ;;  %v51_v17 = vsel %vm47_vm2, %v44_v14, %v38_v13  ;;  %v49_v18 = vsel %vm47_vm2, %v40_v15, %v42_v12  ;;  %v50_v19 = vsel %vm47_vm2, %v38_v13, %v40_v15 }
  0x7a   :  { %611 = vmatprep.subr.msk.mxu0 %vm72_vm0, %v49_v18  ;;  %614 = vmatprep.subr.msk.mxu1 %vm72_vm0, %v51_v17 }
  0x7b   :  { %612 = vmatpush1.msk.msra.mxu0 %vm72_vm0, %v50_v19  ;;  %615 = vmatpush1.msk.msra.mxu1 %vm72_vm0, %v48_v16 }
  0x7c   :  { %616 = vmatmul.mubr.msk.f32.vlgmr.msra.gmra.mxu1 %vm65_vm1, %v24_v20  ;;  %v55_v21 = vpop.permute.xlu1 %54  ;;  %v53_v22 = vpop.permute.xlu0 %52  ;;  %613 = vmatmul.mubr.msk.f32.vlgmr.msra.gmra.mxu0 %vm65_vm1, %v24_v20 }
  0x7d   :  { %471 = vmatprep.mubr.f32.mxu0 %v635_v2  ;;  %542 = vmatprep.mubr.f32.mxu1 %v635_v2  ;;  %v63_v29 = vsel %vm60_vm3, %v53_v22, %v55_v21 }
  0x80   :  { %v59_v23 = vpop.permute.xlu1 %58  ;;  %v57_v24 = vpop.permute.xlu0 %56 }
  0x81   :  { %v64_v25 = vsel %vm60_vm3, %v59_v23, %v53_v22  ;;  %v61_v26 = vsel %vm60_vm3, %v57_v24, %v59_v23  ;;  %v62_v27 = vsel %vm60_vm3, %v55_v21, %v57_v24 }
  0x82   :  { %617 = vmatprep.subr.msk.mxu0 %vm72_vm0, %v62_v27  ;;  %620 = vmatprep.subr.msk.mxu1 %vm72_vm0, %v64_v25 }
  0x83   :  { %618 = vmatpush1.msk.msra.mxu0 %vm72_vm0, %v63_v29  ;;  %621 = vmatpush1.msk.msra.mxu1 %vm72_vm0, %v61_v26 }
  0x84   :  { %619 = vmatmul.mubr.msk.f32.vlgmr.msra.gmra.mxu0 %vm65_vm1, %v25_v28  ;;  %622 = vmatmul.mubr.msk.f32.vlgmr.msra.gmra.mxu1 %vm65_vm1, %v25_v28 }
  0x8d   :  { %v556_v38 = vpop.permute.xlu0 %555  ;;  %v573_v55 = vpop.permute.xlu1 %572 }
  0xc7   :  { %v147_v30 = vpop.f32.mrf.mxu0  ;;  %v224_v31 = vpop.f32.mrf.mxu1 }
  0xc9   :  { %v149_v32 = vpop.f32.mrf.mxu0  ;;  %v226_v33 = vpop.f32.mrf.mxu1 }
  0xcb   :  { %v153_v34 = vpop.f32.mrf.mxu0  ;;  %v230_v35 = vpop.f32.mrf.mxu1 }
  0xcd   :  { %v155_v36 = vpop.f32.mrf.mxu0  ;;  %v232_v37 = vpop.f32.mrf.mxu1 }
 0x13c   :  { %v316_v39 = vpop.f32.mrf.mxu0  ;;  %v387_v40 = vpop.f32.mrf.mxu1 }
 0x13d   :  { %v549_v41 = vadd.f32 %v316_v39, %v147_v30  ;;  %v551_v42 = vadd.f32 %v387_v40, %v224_v31 }
 0x13e   :  { %v389_v43 = vpop.f32.mrf.mxu1  ;;  %v318_v44 = vpop.f32.mrf.mxu0 }
 0x13f   :  { %v552_v45 = vadd.f32 %v389_v43, %v226_v33  ;;  %v558_v46 = vadd.f32 %v556_v38, %v549_v41  ;;  %v560_v47 = vadd.f32 %v556_v38, %v551_v42  ;;  %v550_v48 = vadd.f32 %v318_v44, %v149_v32 }
 0x141   :  { %v561_v49 = vadd.f32 %v556_v38, %v552_v45  ;;  %v562_v50 = vmax.f32 %v558_v46, 0.0  ;;  %v564_v51 = vmax.f32 %v560_v47, 0.0  ;;  %v559_v52 = vadd.f32 %v556_v38, %v550_v48 }
 0x143   :  { %v565_v53 = vmax.f32 %v561_v49, 0.0  ;;  %583 = vst [vmem:[%s747_s5] sm:$0xff] %v562_v50  ;;  %623 = vst [vmem:[%s747_s5 + $0x10] sm:$0xff] %v564_v51  ;;  %v563_v54 = vmax.f32 %v559_v52, 0.0 }
 0x144   :  { %v473_v56 = vpop.f32.mrf.mxu0  ;;  %v544_v57 = vpop.f32.mrf.mxu1 }
 0x145   :  { %624 = vst [vmem:[%s747_s5 + $0x18] sm:$0xff] %v565_v53  ;;  %584 = vst [vmem:[%s747_s5 + $0x8] sm:$0xff] %v563_v54  ;;  %v566_v58 = vadd.f32 %v473_v56, %v153_v34  ;;  %v568_v59 = vadd.f32 %v544_v57, %v230_v35 }
 0x146   :  { %v475_v60 = vpop.f32.mrf.mxu0  ;;  %v546_v61 = vpop.f32.mrf.mxu1 }
 0x147   :  { %v575_v62 = vadd.f32 %v573_v55, %v566_v58  ;;  %v577_v63 = vadd.f32 %v573_v55, %v568_v59  ;;  %v567_v0 = vadd.f32 %v475_v60, %v155_v36  ;;  %v569_v1 = vadd.f32 %v546_v61, %v232_v37 }
 0x149   :  { %v579_v2 = vmax.f32 %v575_v62, 0.0  ;;  %v581_v3 = vmax.f32 %v577_v63, 0.0  ;;  %v576_v4 = vadd.f32 %v573_v55, %v567_v0  ;;  %v578_v5 = vadd.f32 %v573_v55, %v569_v1 }
 0x14b   :  { %585 = vst [vmem:[%s748_s6] sm:$0xff] %v579_v2  ;;  %625 = vst [vmem:[%s748_s6 + $0x10] sm:$0xff] %v581_v3  ;;  %v580_v6 = vmax.f32 %v576_v4, 0.0  ;;  %v582_v7 = vmax.f32 %v578_v5, 0.0 }
 0x14d   :  { %587 = vst.msk [vmem:[%s748_s6 + $0x8] sm:$0xff] %vm586_vm4, %v580_v6  ;;  %626 = vst.msk [vmem:[%s748_s6 + $0x18] sm:$0xff] %vm586_vm4, %v582_v7 }

</bundles_post_ra>
